<compile_context>
chip_gen: v6e
topology: v6e:2x2x1
jax: 0.10.0
libtpu: 0.0.40
codegen_flags: <defaults>
</compile_context>

<pallas_src>
import functools

import jax
import jax.numpy as jnp
from jax import lax
from jax.experimental import pallas as pl
from jax.experimental.pallas import tpu as pltpu


def _self_attention_kernel(x_q_ref, k_ref, v_ref, wq_ref, bq_ref, bv_ref,
                           gamma_ref, o_ref, q_scr, m_scr, l_scr, acc_scr):
    """One (batch b, query-tile qi, kv-tile ki) grid step.

    x_q_ref : (C, tq)   f32   query rows of x[b] (residual + Q projection input)
    k_ref   : (Cq, tk)  bf16  pre-projected keys   (bias included)
    v_ref   : (C, tk)   bf16  pre-projected values (bias NOT included)
    wq_ref  : (C, Cq)   bf16  1x1-conv query weight stored (Cin, Cout)
    bq_ref  : (Cq, 1)   f32   query bias (column)
    bv_ref  : (C, 1)    f32   value bias (added once in finalize)
    gamma   : (1, 1)    f32   scalar in SMEM
    o_ref   : (C, tq)         output tile (channels-first, lane-dense last dim)
    """
    ki = pl.program_id(2)
    n_kv = pl.num_programs(2)

    # ---- init: once per (b, query-tile): project Q, zero online-softmax state.
    @pl.when(ki == 0)
    def _init():
        x_q = x_q_ref[...].astype(jnp.bfloat16)                       # (C, tq)
        q = lax.dot_general(
            wq_ref[...], x_q,
            dimension_numbers=(((0,), (0,)), ((), ())),
            preferred_element_type=jnp.float32) + bq_ref[...]         # (Cq, tq)
        q_scr[...] = q.astype(jnp.bfloat16)
        m_scr[...] = jnp.full_like(m_scr, -jnp.inf)
        l_scr[...] = jnp.zeros_like(l_scr)
        acc_scr[...] = jnp.zeros_like(acc_scr)

    # ---- scores, stored transposed: s_t[j, i] = <k_j, q_i>  -> (tk, tq).
    # Softmax runs over axis 0 (keys); stats are (1, tq) rows so the rescale
    # broadcasts over the (C, tq) accumulator, and P*V keeps channels-first.
    s_t = lax.dot_general(
        k_ref[...], q_scr[...],
        dimension_numbers=(((0,), (0,)), ((), ())),
        preferred_element_type=jnp.float32)                           # (tk, tq)

    m_prev = m_scr[...]                                               # (1, tq)
    m_new = jnp.maximum(m_prev, jnp.max(s_t, axis=0, keepdims=True))
    alpha = jnp.exp(m_prev - m_new)                                   # (1, tq)
    p = jnp.exp(s_t - m_new)                                          # (tk, tq)

    l_scr[...] = alpha * l_scr[...] + jnp.sum(p, axis=0, keepdims=True)
    acc_scr[...] = alpha * acc_scr[...] + jnp.dot(
        v_ref[...], p.astype(jnp.bfloat16),
        preferred_element_type=jnp.float32)                           # (C, tq)
    m_scr[...] = m_new

    # ---- finalize: normalize, add bv (exact: softmax cols sum to 1), gamma,
    # residual, and write the lane-dense (C, tq) tile.
    @pl.when(ki == n_kv - 1)
    def _finalize():
        inv_l = pl.reciprocal(l_scr[...], approx=True)                # (1, tq)
        gamma = gamma_ref[0, 0]
        out = gamma * (acc_scr[...] * inv_l + bv_ref[...]) \
            + x_q_ref[...].astype(jnp.float32)
        o_ref[...] = out.astype(o_ref.dtype)


def _vmem_bytes(C, Cq, tq, tk, x_bytes, out_bytes):
    """Rough VMEM footprint: double-buffered tiles + resident weights + scratch."""
    db = 2  # pipeline double-buffering
    tiles = db * (C * tq * x_bytes        # x query tile (f32 residual / Q input)
                  + Cq * tk * 2           # pre-projected K tile (bf16)
                  + C * tk * 2            # pre-projected V tile (bf16)
                  + C * tq * out_bytes)   # output tile
    weights = db * (C * Cq * 2 + Cq * 4 + C * 4)   # wq (bf16) + bq + bv (f32)
    scratch = Cq * tq * 2 + 2 * tq * 4 + C * tq * 4  # q_scr + m/l + acc
    return tiles + weights + scratch


def _pick_tiles(HW, C, Cq, x_bytes, out_bytes, budget_bytes=32 * 1024 * 1024):
    """Prefer 512/256 tiles (full-width MXU passes on v6e/v7x); shrink the kv
    tile first if the VMEM estimate exceeds the budget (v7x has 64 MiB)."""
    cands = [t for t in (512, 256, 128) if HW % t == 0] or [HW]
    tq, tk = cands[0], cands[0]
    i = 0
    while _vmem_bytes(C, Cq, tq, tk, x_bytes, out_bytes) > budget_bytes and i + 1 < len(cands):
        i += 1
        tk = cands[i]          # shrink kv tile first (keeps output store wide)
    j = 0
    while _vmem_bytes(C, Cq, tq, tk, x_bytes, out_bytes) > budget_bytes and j + 1 < len(cands):
        j += 1
        tq = cands[j]
    return tq, tk


@functools.partial(jax.jit, static_argnames=("tq", "tk"))
def self_attention(x_nchw, wq, bq, wk, bk, wv, bv, gamma, *, tq=None, tk=None):
    """x_nchw: (B, C, H, W); wq/wk: (C, C//8) stored (Cin, Cout); wv: (C, C);
    bq/bk: (C//8,); bv: (C,); gamma: (1,) or scalar.  Returns (B, C, H, W)."""
    B, C, H, W = x_nchw.shape
    HW = H * W
    Cq = wq.shape[1]

    x_bytes = jnp.dtype(x_nchw.dtype).itemsize
    if tq is None or tk is None:
        atq, atk = _pick_tiles(HW, C, Cq, x_bytes, x_bytes)
        tq = atq if tq is None else tq
        tk = atk if tk is None else tk
    n_q = HW // tq
    n_kv = HW // tk

    # Native NCHW flatten; pure metadata reshape, no transposes.
    x = x_nchw.reshape(B, C, HW)

    # ---- Pre-project K and V once (single XLA GEMM each over (C, B*HW)) so the
    # kernel never re-projects them per query tile; the kv stream replayed n_q
    # times is bf16.  bv is folded into the kernel finalize (exact), so V is
    # pre-projected WITHOUT its bias.
    xb = x.astype(jnp.bfloat16)
    k_pre = (jnp.einsum('cd,bcn->bdn', jnp.asarray(wk, jnp.bfloat16), xb,
                        preferred_element_type=jnp.float32)
             + jnp.asarray(bk, jnp.float32)[None, :, None]).astype(jnp.bfloat16)
    v_pre = jnp.einsum('cd,bcn->bdn', jnp.asarray(wv, jnp.bfloat16), xb,
                       preferred_element_type=jnp.float32).astype(jnp.bfloat16)

    wq_b = jnp.asarray(wq, jnp.bfloat16)                 # pre-cast: no per-step converts
    bq_col = jnp.asarray(bq, jnp.float32).reshape(Cq, 1)
    bv_col = jnp.asarray(bv, jnp.float32).reshape(C, 1)
    gamma2 = jnp.asarray(gamma, jnp.float32).reshape(1, 1)

    vmem_est = _vmem_bytes(C, Cq, tq, tk, x_bytes, x_bytes)
    vmem_limit = int(min(48 * 1024 * 1024, max(16 * 1024 * 1024, 2 * vmem_est)))

    # TODO(synk): on v5e, add pipeline_mode=pl.Buffered(3) to the K/V specs if
    # profiling shows exposed DMA on the kv stream.
    out = pl.pallas_call(
        _self_attention_kernel,
        out_shape=jax.ShapeDtypeStruct((B, C, HW), x.dtype),
        grid_spec=pltpu.PrefetchScalarGridSpec(
            num_scalar_prefetch=0,
            grid=(B, n_q, n_kv),
            in_specs=[
                pl.BlockSpec((None, C, tq), lambda b, qi, ki: (b, 0, qi)),   # x query rows (f32)
                pl.BlockSpec((None, Cq, tk), lambda b, qi, ki: (b, 0, ki)),  # K (bf16, pre-projected)
                pl.BlockSpec((None, C, tk), lambda b, qi, ki: (b, 0, ki)),   # V (bf16, pre-projected)
                pl.BlockSpec((C, Cq), lambda b, qi, ki: (0, 0)),             # wq (bf16)
                pl.BlockSpec((Cq, 1), lambda b, qi, ki: (0, 0)),             # bq (f32)
                pl.BlockSpec((C, 1), lambda b, qi, ki: (0, 0)),              # bv (f32)
                pl.BlockSpec(memory_space=pltpu.MemorySpace.SMEM),           # gamma
            ],
            out_specs=pl.BlockSpec((None, C, tq), lambda b, qi, ki: (b, 0, qi)),
            scratch_shapes=[
                pltpu.VMEM((Cq, tq), jnp.bfloat16),   # projected Q tile
                pltpu.VMEM((1, tq), jnp.float32),     # running max m
                pltpu.VMEM((1, tq), jnp.float32),     # running sum l
                pltpu.VMEM((C, tq), jnp.float32),     # output accumulator
            ],
        ),
        compiler_params=pltpu.CompilerParams(
            dimension_semantics=("parallel", "parallel", "arbitrary"),
            vmem_limit_bytes=vmem_limit,
        ),
    )(x, k_pre, v_pre, wq_b, bq_col, bv_col, gamma2)

    return out.reshape(B, C, H, W)


def reference(x_nchw, wq, bq, wk, bk, wv, bv, gamma):
    """Pure-JAX f32 reference matching the PyTorch forward (NCHW semantics)."""
    B, C, H, W = x_nchw.shape
    HW = H * W
    x = x_nchw.reshape(B, C, HW)                                   # (B, C, HW)
    q = jnp.einsum('cd,bcn->bdn', wq, x) + bq[None, :, None]       # (B, Cq, HW)
    k = jnp.einsum('cd,bcn->bdn', wk, x) + bk[None, :, None]       # (B, Cq, HW)
    v = jnp.einsum('cd,bcn->bdn', wv, x) + bv[None, :, None]       # (B, C,  HW)
    attn = jnp.einsum('bdi,bdj->bij', q, k)                        # (B, HW, HW)
    attn = jax.nn.softmax(attn, axis=-1)
    out = jnp.einsum('bcj,bij->bci', v, attn).reshape(B, C, H, W)
    return jnp.reshape(gamma, ())[None] * out + x_nchw


if __name__ == "__main__":
    B, C, H, W = 2, 32, 16, 16          # C divisible by 8 (query/key use C//8 channels)
    Cq = C // 8

    key = jax.random.PRNGKey(0)
    kx, kq, kbq, kk, kbk, kv, kbv = jax.random.split(key, 7)

    x = jax.random.normal(kx, (B, C, H, W), dtype=jnp.float32)

    # Conv2d 1x1 weights stored as (Cin, Cout); biases 1-D like PyTorch.
    scale = 1.0 / jnp.sqrt(C)
    wq = jax.random.normal(kq, (C, Cq), dtype=jnp.float32) * scale
    bq = jax.random.normal(kbq, (Cq,), dtype=jnp.float32) * 0.1
    wk = jax.random.normal(kk, (C, Cq), dtype=jnp.float32) * scale
    bk = jax.random.normal(kbk, (Cq,), dtype=jnp.float32) * 0.1
    wv = jax.random.normal(kv, (C, C), dtype=jnp.float32) * scale
    bv = jax.random.normal(kbv, (C,), dtype=jnp.float32) * 0.1
    # PyTorch inits gamma = 0 (output == input); use 0.5 so the attention path
    # is actually exercised and checked.
    gamma = jnp.full((1,), 0.5, dtype=jnp.float32)

    # tq=tk=128 with HW=256 exercises multiple query tiles AND the multi-step
    # online-softmax (kv) reduction path; production shapes use the 256/512
    # defaults picked by _pick_tiles.
    y = self_attention(x, wq, bq, wk, bk, wv, bv, gamma, tq=128, tk=128)
    y = jax.block_until_ready(y)

    y_ref = reference(x, wq, bq, wk, bk, wv, bv, gamma)
    assert y.shape == x.shape
    # bf16 MXU inputs (f32 accumulation) + approx reciprocal -> intentionally
    # looser tolerance than a pure-f32 comparison.
    assert jnp.allclose(y, y_ref, atol=5e-2, rtol=5e-2), "mismatch vs reference"

    print("KERNEL_OK")
</pallas_src>

<mosaic_0001>
module attributes {stable_mosaic.version = 11 : i64} {
  func.func @_self_attention_kernel(%arg0: i32, %arg1: i32, %arg2: i32, %arg3: memref<1x32x128xf32, #tpu.memory_space<vmem>>, %arg4: memref<1x4x128xbf16, #tpu.memory_space<vmem>>, %arg5: memref<1x32x128xbf16, #tpu.memory_space<vmem>>, %arg6: memref<32x4xbf16, #tpu.memory_space<vmem>>, %arg7: memref<4x1xf32, #tpu.memory_space<vmem>>, %arg8: memref<32x1xf32, #tpu.memory_space<vmem>>, %arg9: memref<1x1xf32, #tpu.memory_space<smem>>, %arg10: memref<1x32x128xf32, #tpu.memory_space<vmem>>, %arg11: memref<4x128xbf16, #tpu.memory_space<vmem>>, %arg12: memref<1x128xf32, #tpu.memory_space<vmem>>, %arg13: memref<1x128xf32, #tpu.memory_space<vmem>>, %arg14: memref<32x128xf32, #tpu.memory_space<vmem>>) attributes {dimension_semantics = [#tpu.dimension_semantics<parallel>, #tpu.dimension_semantics<parallel>, #tpu.dimension_semantics<arbitrary>], iteration_bounds = array<i64: 2, 2, 2>, scalar_prefetch = 0 : i64, scratch_operands = 4 : i64, tpu.core_type = #tpu.core_type<tc>, window_params = [{transform_indices = @transform_0, window_bounds = array<i64: 1, 32, 128>}, {transform_indices = @transform_1, window_bounds = array<i64: 1, 4, 128>}, {transform_indices = @transform_2, window_bounds = array<i64: 1, 32, 128>}, {pipeline_mode = #tpu.pipeline_mode<synchronous>, transform_indices = @transform_3, window_bounds = array<i64: 32, 4>}, {pipeline_mode = #tpu.pipeline_mode<synchronous>, transform_indices = @transform_4, window_bounds = array<i64: 4, 1>}, {pipeline_mode = #tpu.pipeline_mode<synchronous>, transform_indices = @transform_5, window_bounds = array<i64: 32, 1>}, {transform_indices = @transform_6, window_bounds = array<i64: 1, 1>}, {transform_indices = @transform_7, window_bounds = array<i64: 1, 32, 128>}]} {
    %c0_i32 = arith.constant 0 : i32
    %0 = arith.cmpi eq, %arg2, %c0_i32 : i32
    %1 = arith.extui %0 : i1 to i32
    %c0_i32_0 = arith.constant 0 : i32
    %2 = arith.cmpi ne, %1, %c0_i32_0 : i32
    scf.if %2 {
      %c0_24 = arith.constant 0 : index
      %c0_25 = arith.constant 0 : index
      %c0_26 = arith.constant 0 : index
      %35 = vector.load %arg3[%c0_24, %c0_25, %c0_26] : memref<1x32x128xf32, #tpu.memory_space<vmem>>, vector<1x32x128xf32>
      %36 = vector.shape_cast %35 : vector<1x32x128xf32> to vector<32x128xf32>
      %37 = arith.truncf %36 : vector<32x128xf32> to vector<32x128xbf16>
      %c0_27 = arith.constant 0 : index
      %c0_28 = arith.constant 0 : index
      %38 = vector.load %arg6[%c0_27, %c0_28] : memref<32x4xbf16, #tpu.memory_space<vmem>>, vector<32x4xbf16>
      %cst_29 = arith.constant dense<0.000000e+00> : vector<4x128xf32>
      %39 = tpu.matmul %38, %37, %cst_29 {dimension_numbers = #tpu.dot_dimension_numbers<[0], [0], [1], [1], [0, 1, 1, 1], [], []>} : vector<32x4xbf16>, vector<32x128xbf16>, vector<4x128xf32> -> vector<4x128xf32>
      %c0_30 = arith.constant 0 : index
      %c0_31 = arith.constant 0 : index
      %40 = vector.load %arg7[%c0_30, %c0_31] : memref<4x1xf32, #tpu.memory_space<vmem>>, vector<4x1xf32>
      %41 = vector.broadcast %40 : vector<4x1xf32> to vector<4x128xf32>
      %42 = arith.addf %39, %41 : vector<4x128xf32>
      %43 = arith.truncf %42 : vector<4x128xf32> to vector<4x128xbf16>
      %c0_32 = arith.constant 0 : index
      %c0_33 = arith.constant 0 : index
      %44 = vector.load %arg11[%c0_32, %c0_33] : memref<4x128xbf16, #tpu.memory_space<vmem>>, vector<4x128xbf16>
      tpu.vector_store %arg11[%c0_32, %c0_33], %43 {strides = array<i32>} : memref<4x128xbf16, #tpu.memory_space<vmem>>, vector<4x128xbf16>,
      %cst_34 = arith.constant 0xFF800000 : f32
      %45 = vector.broadcast %cst_34 : f32 to vector<1x128xf32>
      %c0_35 = arith.constant 0 : index
      %c0_36 = arith.constant 0 : index
      %46 = vector.load %arg12[%c0_35, %c0_36] : memref<1x128xf32, #tpu.memory_space<vmem>>, vector<1x128xf32>
      tpu.vector_store %arg12[%c0_35, %c0_36], %45 {strides = array<i32>} : memref<1x128xf32, #tpu.memory_space<vmem>>, vector<1x128xf32>,
      %cst_37 = arith.constant 0.000000e+00 : f32
      %47 = vector.broadcast %cst_37 : f32 to vector<1x128xf32>
      %c0_38 = arith.constant 0 : index
      %c0_39 = arith.constant 0 : index
      %48 = vector.load %arg13[%c0_38, %c0_39] : memref<1x128xf32, #tpu.memory_space<vmem>>, vector<1x128xf32>
      tpu.vector_store %arg13[%c0_38, %c0_39], %47 {strides = array<i32>} : memref<1x128xf32, #tpu.memory_space<vmem>>, vector<1x128xf32>,
      %cst_40 = arith.constant 0.000000e+00 : f32
      %49 = vector.broadcast %cst_40 : f32 to vector<32x128xf32>
      %c0_41 = arith.constant 0 : index
      %c0_42 = arith.constant 0 : index
      %50 = vector.load %arg14[%c0_41, %c0_42] : memref<32x128xf32, #tpu.memory_space<vmem>>, vector<32x128xf32>
      tpu.vector_store %arg14[%c0_41, %c0_42], %49 {strides = array<i32>} : memref<32x128xf32, #tpu.memory_space<vmem>>, vector<32x128xf32>,
    } else {
    }
    %c0 = arith.constant 0 : index
    %c0_1 = arith.constant 0 : index
    %c0_2 = arith.constant 0 : index
    %3 = vector.load %arg4[%c0, %c0_1, %c0_2] : memref<1x4x128xbf16, #tpu.memory_space<vmem>>, vector<1x4x128xbf16>
    %4 = vector.shape_cast %3 : vector<1x4x128xbf16> to vector<4x128xbf16>
    %c0_3 = arith.constant 0 : index
    %c0_4 = arith.constant 0 : index
    %5 = vector.load %arg11[%c0_3, %c0_4] : memref<4x128xbf16, #tpu.memory_space<vmem>>, vector<4x128xbf16>
    %cst = arith.constant dense<0.000000e+00> : vector<128x128xf32>
    %6 = tpu.matmul %4, %5, %cst {dimension_numbers = #tpu.dot_dimension_numbers<[0], [0], [1], [1], [0, 1, 1, 1], [], []>} : vector<4x128xbf16>, vector<4x128xbf16>, vector<128x128xf32> -> vector<128x128xf32>
    %c0_5 = arith.constant 0 : index
    %c0_6 = arith.constant 0 : index
    %7 = vector.load %arg12[%c0_5, %c0_6] : memref<1x128xf32, #tpu.memory_space<vmem>>, vector<1x128xf32>
    %cst_7 = arith.constant dense<0xFF800000> : vector<128xf32>
    %8 = vector.multi_reduction <maximumf>, %6, %cst_7 [0] : vector<128x128xf32> to vector<128xf32>
    %9 = vector.shape_cast %8 : vector<128xf32> to vector<1x128xf32>
    %10 = arith.maximumf %7, %9 : vector<1x128xf32>
    %11 = arith.subf %7, %10 : vector<1x128xf32>
    %12 = math.exp %11 : vector<1x128xf32>
    %13 = vector.broadcast %10 : vector<1x128xf32> to vector<128x128xf32>
    %14 = arith.subf %6, %13 : vector<128x128xf32>
    %15 = math.exp %14 : vector<128x128xf32>
    %c0_8 = arith.constant 0 : index
    %c0_9 = arith.constant 0 : index
    %16 = vector.load %arg13[%c0_8, %c0_9] : memref<1x128xf32, #tpu.memory_space<vmem>>, vector<1x128xf32>
    %17 = arith.mulf %12, %16 : vector<1x128xf32>
    %cst_10 = arith.constant dense<0.000000e+00> : vector<128xf32>
    %18 = vector.multi_reduction <add>, %15, %cst_10 [0] : vector<128x128xf32> to vector<128xf32>
    %19 = vector.shape_cast %18 : vector<128xf32> to vector<1x128xf32>
    %20 = arith.addf %17, %19 : vector<1x128xf32>
    %c0_11 = arith.constant 0 : index
    %c0_12 = arith.constant 0 : index
    %21 = vector.load %arg13[%c0_11, %c0_12] : memref<1x128xf32, #tpu.memory_space<vmem>>, vector<1x128xf32>
    tpu.vector_store %arg13[%c0_11, %c0_12], %20 {strides = array<i32>} : memref<1x128xf32, #tpu.memory_space<vmem>>, vector<1x128xf32>,
    %c0_13 = arith.constant 0 : index
    %c0_14 = arith.constant 0 : index
    %22 = vector.load %arg14[%c0_13, %c0_14] : memref<32x128xf32, #tpu.memory_space<vmem>>, vector<32x128xf32>
    %23 = vector.broadcast %12 : vector<1x128xf32> to vector<32x128xf32>
    %24 = arith.mulf %23, %22 : vector<32x128xf32>
    %c0_15 = arith.constant 0 : index
    %c0_16 = arith.constant 0 : index
    %c0_17 = arith.constant 0 : index
    %25 = vector.load %arg5[%c0_15, %c0_16, %c0_17] : memref<1x32x128xbf16, #tpu.memory_space<vmem>>, vector<1x32x128xbf16>
    %26 = vector.shape_cast %25 : vector<1x32x128xbf16> to vector<32x128xbf16>
    %27 = arith.truncf %15 : vector<128x128xf32> to vector<128x128xbf16>
    %cst_18 = arith.constant dense<0.000000e+00> : vector<32x128xf32>
    %28 = tpu.matmul %26, %27, %cst_18 {dimension_numbers = #tpu.dot_dimension_numbers<[1], [0], [0], [1], [0, 0, 1, 1], [], []>} : vector<32x128xbf16>, vector<128x128xbf16>, vector<32x128xf32> -> vector<32x128xf32>
    %29 = arith.addf %24, %28 : vector<32x128xf32>
    %c0_19 = arith.constant 0 : index
    %c0_20 = arith.constant 0 : index
    %30 = vector.load %arg14[%c0_19, %c0_20] : memref<32x128xf32, #tpu.memory_space<vmem>>, vector<32x128xf32>
    tpu.vector_store %arg14[%c0_19, %c0_20], %29 {strides = array<i32>} : memref<32x128xf32, #tpu.memory_space<vmem>>, vector<32x128xf32>,
    %c0_21 = arith.constant 0 : index
    %c0_22 = arith.constant 0 : index
    %31 = vector.load %arg12[%c0_21, %c0_22] : memref<1x128xf32, #tpu.memory_space<vmem>>, vector<1x128xf32>
    tpu.vector_store %arg12[%c0_21, %c0_22], %10 {strides = array<i32>} : memref<1x128xf32, #tpu.memory_space<vmem>>, vector<1x128xf32>,
    %c1_i32 = arith.constant 1 : i32
    %32 = arith.cmpi eq, %arg2, %c1_i32 : i32
    %33 = arith.extui %32 : i1 to i32
    %c0_i32_23 = arith.constant 0 : i32
    %34 = arith.cmpi ne, %33, %c0_i32_23 : i32
    scf.if %34 {
      %c0_24 = arith.constant 0 : index
      %c0_25 = arith.constant 0 : index
      %35 = vector.load %arg13[%c0_24, %c0_25] : memref<1x128xf32, #tpu.memory_space<vmem>>, vector<1x128xf32>
      %36 = tpu.reciprocal %35 {approx = true} : vector<1x128xf32> -> vector<1x128xf32>
      %c0_26 = arith.constant 0 : index
      %c0_27 = arith.constant 0 : index
      %37 = memref.load %arg9[%c0_26, %c0_27] : memref<1x1xf32, #tpu.memory_space<smem>>
      %c0_28 = arith.constant 0 : index
      %c0_29 = arith.constant 0 : index
      %38 = vector.load %arg14[%c0_28, %c0_29] : memref<32x128xf32, #tpu.memory_space<vmem>>, vector<32x128xf32>
      %39 = vector.broadcast %36 : vector<1x128xf32> to vector<32x128xf32>
      %40 = arith.mulf %38, %39 : vector<32x128xf32>
      %c0_30 = arith.constant 0 : index
      %c0_31 = arith.constant 0 : index
      %41 = vector.load %arg8[%c0_30, %c0_31] : memref<32x1xf32, #tpu.memory_space<vmem>>, vector<32x1xf32>
      %42 = vector.broadcast %41 : vector<32x1xf32> to vector<32x128xf32>
      %43 = arith.addf %40, %42 : vector<32x128xf32>
      %44 = vector.broadcast %37 : f32 to vector<32x128xf32>
      %45 = arith.mulf %44, %43 : vector<32x128xf32>
      %c0_32 = arith.constant 0 : index
      %c0_33 = arith.constant 0 : index
      %c0_34 = arith.constant 0 : index
      %46 = vector.load %arg3[%c0_32, %c0_33, %c0_34] : memref<1x32x128xf32, #tpu.memory_space<vmem>>, vector<1x32x128xf32>
      %47 = vector.shape_cast %46 : vector<1x32x128xf32> to vector<32x128xf32>
      %48 = arith.addf %45, %47 : vector<32x128xf32>
      %c0_35 = arith.constant 0 : index
      %c0_36 = arith.constant 0 : index
      %c0_37 = arith.constant 0 : index
      %49 = vector.load %arg10[%c0_35, %c0_36, %c0_37] : memref<1x32x128xf32, #tpu.memory_space<vmem>>, vector<1x32x128xf32>
      %50 = vector.shape_cast %49 : vector<1x32x128xf32> to vector<32x128xf32>
      %51 = vector.shape_cast %48 : vector<32x128xf32> to vector<1x32x128xf32>
      tpu.vector_store %arg10[%c0_35, %c0_36, %c0_37], %51 {strides = array<i32>} : memref<1x32x128xf32, #tpu.memory_space<vmem>>, vector<1x32x128xf32>,
    } else {
    }
    return
  }
  func.func @transform_0(%arg0: i32, %arg1: i32, %arg2: i32) -> (i32, i32, i32) {
    %c0_i32 = arith.constant 0 : i32
    %c0_i32_0 = arith.constant 0 : i32
    return %arg0, %c0_i32, %arg1 : i32, i32, i32
  }
  func.func @transform_1(%arg0: i32, %arg1: i32, %arg2: i32) -> (i32, i32, i32) {
    %c0_i32 = arith.constant 0 : i32
    %c0_i32_0 = arith.constant 0 : i32
    return %arg0, %c0_i32, %arg2 : i32, i32, i32
  }
  func.func @transform_2(%arg0: i32, %arg1: i32, %arg2: i32) -> (i32, i32, i32) {
    %c0_i32 = arith.constant 0 : i32
    %c0_i32_0 = arith.constant 0 : i32
    return %arg0, %c0_i32, %arg2 : i32, i32, i32
  }
  func.func @transform_3(%arg0: i32, %arg1: i32, %arg2: i32) -> (i32, i32) {
    %c0_i32 = arith.constant 0 : i32
    %c0_i32_0 = arith.constant 0 : i32
    %c0_i32_1 = arith.constant 0 : i32
    return %c0_i32, %c0_i32_0 : i32, i32
  }
  func.func @transform_4(%arg0: i32, %arg1: i32, %arg2: i32) -> (i32, i32) {
    %c0_i32 = arith.constant 0 : i32
    %c0_i32_0 = arith.constant 0 : i32
    %c0_i32_1 = arith.constant 0 : i32
    return %c0_i32, %c0_i32_0 : i32, i32
  }
  func.func @transform_5(%arg0: i32, %arg1: i32, %arg2: i32) -> (i32, i32) {
    %c0_i32 = arith.constant 0 : i32
    %c0_i32_0 = arith.constant 0 : i32
    %c0_i32_1 = arith.constant 0 : i32
    return %c0_i32, %c0_i32_0 : i32, i32
  }
  func.func @transform_6(%arg0: i32, %arg1: i32, %arg2: i32) -> (i32, i32) {
    %c0_i32 = arith.constant 0 : i32
    %c0_i32_0 = arith.constant 0 : i32
    %c0_i32_1 = arith.constant 0 : i32
    return %c0_i32, %c0_i32_0 : i32, i32
  }
  func.func @transform_7(%arg0: i32, %arg1: i32, %arg2: i32) -> (i32, i32, i32) {
    %c0_i32 = arith.constant 0 : i32
    %c0_i32_0 = arith.constant 0 : i32
    return %arg0, %c0_i32, %arg1 : i32, i32, i32
  }
}

</mosaic_0001>

<bundles_post_ra>
// kernel: self_attention.1
= control target key start
LH: loop header
LB: loop body
LE: loop exit
PB: predicated region body
PF: predicated region fallthrough
CT: control target
= control target key end

     0   :  { %s1807_s0 = inlined_call_operand.vmem [shape: f32[2,32,256], index: 0, kind: input, shape index: {}]   ;;  %s1808_s1 = inlined_call_operand.vmem [shape: bf16[2,4,256], index: 1, kind: input, shape index: {}]   ;;  %s1809_s2 = inlined_call_operand.vmem [shape: bf16[2,32,256], index: 2, kind: input, shape index: {}]   ;;  %s1810_s3 = inlined_call_operand.vmem [shape: bf16[32,4], index: 3, kind: input, shape index: {}]   ;;  %s1811_s4 = inlined_call_operand.vmem [shape: f32[4,1], index: 4, kind: input, shape index: {}]   ;;  %s1812_s5 = inlined_call_operand.vmem [shape: f32[32,1], index: 5, kind: input, shape index: {}]   ;;  %s1813_s6 = inlined_call_operand.<no memory space> [shape: f32[1,1], index: 6, kind: input, shape index: {}]   ;;  %s1814_s7 = inlined_call_operand.vmem [shape: f32[2,32,256], index: 7, kind: output, shape index: {}]  }
   0x1   :  { %1818 = sst [smem:[#allocation14_spill]] %s1807_s0 }
   0x2   :  { %1819 = sst [smem:[#allocation15_spill]] %s1814_s7 }
   0x3   :  { %12 = sst [smem:[#allocation6]] %s1813_s6 }
   0x4   :  { %s1519_s26 = smov 0   ;;  %s1521_s27 = smov 0  }
   0x5   :  { %s1523_s28 = smov 0   ;;  %s1525_s29 = smov 0  }
   0x6   :  { %s1527_s30 = smov 0   ;;  %s1529_s8 = smov 0  }
   0x7   :  { %s1531_s9 = smov 0   ;;  %s1533_s10 = smov 0  }
   0x8   :  { %s1535_s11 = smov 0   ;;  %s1537_s12 = smov 0  }
   0x9   :  { %s1539_s6 = smov 0  }
   0xa LB: > { %1820 = sst [smem:[#allocation10_spill]] %s1449_s8  ;;  %s30_s13 = sadd.s32 1, %s1457_s10  ;;  %s1469_s6 = sphi %s1539_s6, %s18_s6   ;;  %s1465_s12 = sphi %s1537_s12, %s1842_s12   ;;  %s1461_s11 = sphi %s1535_s11, %s1841_s11   ;;  %s1457_s10 = sphi %s1533_s10, %s1840_s10   ;;  %s1453_s9 = sphi %s1531_s9, %s1839_s9   ;;  %s1449_s8 = sphi %s1529_s8, %s1838_s8   ;;  %s1445_s30 = sphi %s1527_s30, %s1837_s30   ;;  %s1441_s29 = sphi %s1525_s29, %s1836_s29   ;;  %s1437_s28 = sphi %s1523_s28, %s1835_s28   ;;  %s1433_s27 = sphi %s1521_s27, %s1834_s27   ;;  %s1429_s26 = sphi %s1519_s26, %s1833_s26  }
   0xb   : > { %p31_p0 = scmp.ge.s32.totalorder %s30_s13, 2  ;;  %s33_s14 = sadd.s32 1, %s1461_s11 }
   0xc   : > { %p53_p1 = scmp.ne.s32.totalorder %s1441_s29, %s1437_s28  ;;  %p54_p2 = scmp.eq.s32.totalorder %s1469_s6, 0 }
   0xd   : > { %s1844_s13 = smov (%p31_p0, %s30_s13), 0  ;;  %s1846_s14 = smov (!%p31_p0, %s33_s14), %s1461_s11 }
   0xe   : > { %1821 = sst [smem:[#allocation11_spill]] %s1844_s13  ;;  %p35_p3 = scmp.ge.s32.totalorder %s1846_s14, 2 }
   0xf   : > { %s37_s15 = sadd.s32 1, %s1465_s12  ;;  %s1140_s16 = sadd.s32 4294967295, %s1469_s6  }
  0x10   : > { %p1587_p4 = por %p54_p2, %p53_p1  ;;  %s1848_s14 = smov (%p35_p3, %s1846_s14), 0 }
  0x11   : > { %1823 = sst [smem:[#allocation12_spill]] %s1848_s14  ;;  %s1850_s15 = smov (!%p35_p3, %s37_s15), %s1465_s12 }
  0x12   : > { %s98_s18 = ssub.s32 %s1457_s10, %s1844_s13  ;;  %p109_p5 = scmp.ne.s32.totalorder %s1433_s27, %s1429_s26 }
  0x13   : > { %p39_p6 = scmp.ge.s32.totalorder %s1850_s15, 2  ;;  %p225_p7 = scmp.eq.s32.totalorder %s1140_s16, 7 }
  0x14   : > { %s42_s19 = ssub.s32 %s1461_s11, %s1848_s14  ;;  %p1600_p8 = por %p109_p5, %p54_p2 }
  0x15   : > { %s1852_s15 = smov (%p39_p6, %s1850_s15), 0  ;;  %s46_s21 = sadd.s32 1, %s1441_s29 }
  0x16   : > { %1825 = sst [smem:[#allocation13_spill]] %s1852_s15  ;;  %p1610_p9 = por %p225_p7, %p53_p1 }
  0x17   : > { %s41_s23 = ssub.s32 %s1465_s12, %s1852_s15  ;;  %s102_s24 = sadd.s32 1, %s1433_s27 }
  0x18   : > { %s43_s25 = sor.u32 %s42_s19, %s41_s23  ;;  %s99_s13 = sor.u32 %s98_s18, %s41_s23 }
  0x19   : > { %p44_p10 = scmp.eq.s32.totalorder %s43_s25, 0  ;;  %p100_p11 = scmp.eq.s32.totalorder %s99_s13, 0 }
  0x1a   : > { %p1143_p12 = scmp.ge.s32.totalorder %s1469_s6, 8 }
  0x1b   : > { %s1618_s16 = scalar_select %p44_p10, %s1441_s29, %s46_s21  }
  0x1c   : > { %s1621_s14 = scalar_select %p100_p11, %s1433_s27, %s102_s24  }
  0x1d   : > { %259 = sbr.rel (%p1143_p12) target bundleno = 54 (0x36), region = 32 }
  0x22   : > { %262 = sbr.rel (!%p1587_p4) target bundleno = 46 (0x2e), region = 36  ;;  %s264_s7 = sand.u32 (%p1587_p4), 1, %s1441_s29  }
  0x23   : > { %s1145_s15 = sshll.u32 (%p1587_p4), %s1465_s12, 3  ;;  %s1144_s8 = sshll.u32 (%p1587_p4), %s264_s7, 5 }
  0x24   : > { %s268_s19 = sadd.s32 (%p1587_p4), %s1461_s11, %s1145_s15  ;;  %s1827_s0 = sld [smem:[#allocation14_spill]] (%p1587_p4) }
  0x25   : > { %s1146_s18 = sshll.u32 (%p1587_p4), %s268_s19, 3  ;;  %s266_s24 = scalar_lea.vmem (%p1587_p4), [#allocation7], %s1144_s8 }
  0x2a   : > { %s270_s21 = scalar_lea.vmem %s1827_s0, %s1146_s18 }
  0x2b   : > { %v305_v0 = vld [vmem:[%s270_s21] sm:$0xff]  ;;  %v307_v1 = vld [vmem:[%s270_s21 + $0x10] sm:$0xff] }
  0x2c   : > { %v309_v2 = vld [vmem:[%s270_s21 + $0x20] sm:$0xff]  ;;  %306 = vst [vmem:[%s266_s24] sm:$0xff] %v305_v0  ;;  %308 = vst [vmem:[%s266_s24 + $0x8] sm:$0xff] %v307_v1  ;;  %v311_v3 = vld [vmem:[%s270_s21 + $0x30] sm:$0xff] }
  0x2d   : > { %310 = vst [vmem:[%s266_s24 + $0x10] sm:$0xff] %v309_v2  ;;  %312 = vst [vmem:[%s266_s24 + $0x18] sm:$0xff] %v311_v3 }
  0x2e PF: > { %329 = sbr.rel (!%p1600_p8) target bundleno = 54 (0x36), region = 78  ;;  %s331_s7 = sand.u32 (%p1600_p8), 1, %s1433_s27  }
  0x2f   : > { %s1148_s15 = sshll.u32 (%p1600_p8), %s1465_s12, 3  ;;  %s1147_s17 = sshll.u32 (%p1600_p8), %s331_s7, 4 }
  0x30   : > { %s335_s25 = sadd.s32 (%p1600_p8), %s1457_s10, %s1148_s15  ;;  %s333_s13 = scalar_lea.vmem (%p1600_p8), [#allocation8], %s1147_s17 }
  0x31   : > { %s1149_s19 = sshll.u32 (%p1600_p8), %s335_s25, 2 }
  0x32   : > { %s337_s8 = scalar_lea.vmem (%p1600_p8), %s1809_s2, %s1149_s19 }
  0x33   : > { %v354_v4 = vld [vmem:[%s337_s8] sm:$0xf]  ;;  %v356_v5 = vld [vmem:[%s337_s8 + $0x8] sm:$0xf]  ;;  %v358_v6 = vld [vmem:[%s337_s8 + $0x10] sm:$0xf] }
  0x34   : > { %355 = vst [vmem:[%s333_s13] sm:$0xf] %v354_v4  ;;  %357 = vst [vmem:[%s333_s13 + $0x4] sm:$0xf] %v356_v5  ;;  %v360_v7 = vld [vmem:[%s337_s8 + $0x18] sm:$0xf] }
  0x35   : > { %359 = vst [vmem:[%s333_s13 + $0x8] sm:$0xf] %v358_v6  ;;  %361 = vst [vmem:[%s333_s13 + $0xc] sm:$0xf] %v360_v7 }
  0x36 PF: > { %p1150_p13 = scmp.ge.s32.totalorder %s1469_s6, 1  ;;  %p392_p0 = scmp.lt.s32.totalorder %s1469_s6, 9 }
  0x38   : > { %p393_p1 = pnand %p1150_p13, %p392_p0 }
  0x39   : > { %s399_s20 = sand.u32 (!%p393_p1), 1, %s1437_s28   ;;  %s406_s21 = sand.u32 (!%p393_p1), 1, %s1429_s26  }
  0x3a   : > { %396 = sbr.rel (%p393_p1) target bundleno = 1132 (0x46c), region = 119  ;;  %s1151_s24 = sshll.u32 (!%p393_p1), %s399_s20, 5 }
  0x3b   : > { %s1644_s7 = sshll.u32 (!%p393_p1), %s406_s21, 4  ;;  %p448_p2 = scmp.lt.s32.totalorder (!%p393_p1), %s1453_s9, 1 }
  0x3c   : > { %p450_p3 = scmp.lt.s32.totalorder (!%p393_p1), %s1445_s30, 1  ;;  %s1655_s0 = scalar_lea.vmem (!%p393_p1), [#allocation7], %s1151_s24 }
  0x3d   : > { %s408_s28 = scalar_lea.vmem (!%p393_p1), [#allocation8], %s1644_s7  ;;  %s1658_s26 = scalar_lea.vmem (!%p393_p1), [#allocation9], %s1151_s24 }
  0x3e   : > { %p1156_p4 = scmp.ne.s32.totalorder (!%p393_p1), %s1445_s30, 0 }
  0x3f   : > { %s449_s15 = scalar_select %p448_p2, %s1453_s9, 1 }
  0x40   : > { %s451_s17 = scalar_select %p450_p3, %s1445_s30, 1 }
  0x41   : > { %s1154_s25 = sshll.u32 %s449_s15, 1  ;;  %460 = sbr.rel (%p1156_p4) target bundleno = 369 (0x171), region = 131 }
  0x42   : > { %s453_s19 = sadd.s32 %s1154_s25, %s451_s17 }
  0x43   : > { %s1155_s18 = sshll.u32 %s453_s19, 1 }
  0x44   : > { %s1653_s13 = scalar_lea.vmem %s1808_s1, %s1155_s18 }
  0x46   : > { %v1341_v8 = vld [vmem:[%s1810_s3] sm:$0xff]   ;;  %v1342_v9 = vld [vmem:[%s1810_s3 + $0x8] sm:$0xff]   ;;  %v1471_v10 = vmov 0.0   ;;  %v463_v11 = vld [vmem:[%s1655_s0 + $0x10] sm:$0xff]  ;;  %vm1472_vm0 = vmmov 0   ;;  %v1473_v16 = vmov 0  }
  0x47   : > { %1198 = vmatprep.subr.bf16.mxu0 %v1471_v10  ;;  %552 = vst [vmem:[#allocation4] sm:$0x1] %v1471_v10  ;;  %553 = vst [vmem:[#allocation5 + $0x10] sm:$0xff] %v1471_v10  ;;  %489 = vxpose.xlu0.c.b16.start [1/2] (short) (narrow) %v1341_v8, 16  ;;  %v464_v12 = vld [vmem:[%s1655_s0 + $0x18] sm:$0xff]  ;;  %v461_v13 = vld [vmem:[%s1655_s0] sm:$0xff] }
  0x48   : > { %554 = vst [vmem:[#allocation5] sm:$0xff] %v1471_v10  ;;  %555 = vst [vmem:[#allocation5 + $0x18] sm:$0xff] %v1471_v10  ;;  %1202 = vmatprep.mubr.msk.bf16.mxu0 %vm1472_vm0, %v1471_v10  ;;  %v466_v14 = vpack.c.bf16 %v464_v12, %v463_v11  ;;  %v462_v15 = vld [vmem:[%s1655_s0 + $0x8] sm:$0xff]  ;;  %1339 = vset.pattern.permute.xlu1 %v1473_v16  ;;  %v471_v17 = vld [vmem:[%s1811_s4] sm:$0xf]  ;;  %vm505_vm1 = vcmask 261120  }
  0x49   : > { %556 = vst [vmem:[#allocation5 + $0x8] sm:$0xff] %v1471_v10  ;;  %474 = vperm.xlu1 %1339, %v471_v17   ;;  %v465_v18 = vpack.c.bf16 %v462_v15, %v461_v13  ;;  %v1474_v20 = vmov -inf  }
  0x4a   : > { %1199 = vmatpush3.bf16.msra.mxu0 %v466_v14  ;;  %551 = vst [vmem:[#allocation3] sm:$0x1] %v1474_v20 }
  0x4b   : > { %490 = vxpose.xlu0.c.b16.end [2/2] (short) (narrow) %v1342_v9, 16  ;;  %1200 = vmatprep.subr.bf16.mxu0 %v1471_v10 }
  0x4e   : > { %1201 = vmatpush3.bf16.msra.mxu0 %v465_v18 }
  0x54   : > { %1340 = vset.pattern.permute.xlu0 %v1473_v16 }
  0xa9   : > { %v497_v19 = vpop.trf.xlu0 }
  0xaa   : > { %1203 = vmatmul.mubr.msk.bf16.vlgmr.msra.gmra.mxu0 %vm505_vm1, %v497_v19 }
  0xc4   : > { %v475_v21 = vpop.permute.xlu1 %474 }
 0x16a   : > { %v543_v22 = vpop.f32.mrf.mxu0 }
 0x16b   : > { %v544_v23 = vadd.f32 %v543_v22, %v475_v21 }
 0x16c   : > { %v1204_v24 = vpop.f32.mrf.mxu0 }
 0x16d   : > { %v549_v25 = vpack.c.bf16 %v544_v23, %v544_v23 }
 0x16e   : > { %v546_v26 = vpop.f32.mrf.mxu0 }
 0x16f   : > { %550 = vst [vmem:[#allocation2] sm:$0x3] %v549_v25 }
 0x170   : > { %v1205_v27 = vpop.f32.mrf.mxu0 }
 0x171 PF: > { %v557_v28 = vld [vmem:[%s1653_s13] sm:$0x3]  ;;  %vm600_vm2 = vcmask 1041408   ;;  %vm575_vm3 = vcmask 31744   ;;  %v1343_v39 = vld [vmem:[%s408_s28] sm:$0xff]   ;;  %v728_v9 = vlaneseq  ;;  %p1170_p5 = scmp.ne.s32.totalorder %s1445_s30, 1 }
 0x172   : > { %559 = vxpose.xlu0.c.b16.start.end [1/1] (short) %v557_v28, 128  ;;  %1240 = vmatprep.mubr.bf16.mxu1 %v1343_v39  ;;  %v701_v14 = vld [vmem:[#allocation3] sm:$0x1]  ;;  %s908_s20 = sld [smem:[#allocation6]] (!%p1170_p5) }
 0x173   : > { %v729_v12 = vshrl.u32 %v728_v9, 7 }
 0x175   : > { %v1709_v16 = vsub.s32 0, %v729_v12 }
 0x176   : > { %v558_v29 = vld [vmem:[#allocation2] sm:$0x3] }
 0x177   : > { %1244 = vmatprep.subr.msk.bf16.mxu0 %vm600_vm2, %v558_v29  ;;  %v602_v30 = vsel %vm600_vm2, %v558_v29, 0 }
 0x178   : > { %1207 = vmatpush3.bf16.msra.mxu0 %v602_v30 }
 0x1d4   : > { %v567_v31 = vpop.trf.xlu0 }
 0x1d5   : > { %1208 = vmatprep.mubr.msk.bf16.mxu0 %vm575_vm3, %v567_v31 }
 0x1d8   : > { %v568_v32 = vpop.trf.xlu0 }
 0x1d9   : > { %1209 = vmatmul.mubr.msk.bf16.vlgmr.msra.gmra.mxu0 %vm575_vm3, %v568_v32 }
 0x1dc   : > { %v569_v33 = vpop.trf.xlu0 }
 0x1dd   : > { %1212 = vmatprep.mubr.msk.bf16.mxu0 %vm575_vm3, %v569_v33 }
 0x1e0   : > { %v570_v34 = vpop.trf.xlu0 }
 0x1e1   : > { %1213 = vmatmul.mubr.msk.bf16.gmra.mxu0 %vm575_vm3, %v570_v34 }
 0x1e4   : > { %v571_v35 = vpop.trf.xlu0 }
 0x1e5   : > { %1216 = vmatprep.mubr.msk.bf16.mxu0 %vm575_vm3, %v571_v35 }
 0x1e8   : > { %v572_v36 = vpop.trf.xlu0 }
 0x1e9   : > { %1217 = vmatmul.mubr.msk.bf16.gmra.mxu0 %vm575_vm3, %v572_v36 }
 0x1ec   : > { %v573_v37 = vpop.trf.xlu0 }
 0x1ed   : > { %1220 = vmatprep.mubr.msk.bf16.mxu0 %vm575_vm3, %v573_v37 }
 0x1f0   : > { %v574_v38 = vpop.trf.xlu0 }
 0x1f1   : > { %1221 = vmatmul.mubr.msk.bf16.gmra.mxu0 %vm575_vm3, %v574_v38 }
 0x299   : > { %v1210_v40 = vpop.f32.mrf.mxu0 }
 0x29b   : > { %v638_v41 = vpop.f32.mrf.mxu0 }
 0x29d   : > { %v1211_v42 = vpop.f32.mrf.mxu0 }
 0x29f   : > { %v641_v43 = vpop.f32.mrf.mxu0 }
 0x2a1   : > { %v1685_v44 = vpop.f32.mrf.mxu0 }
 0x2a2   : > { %v704_v55 = vmax.f32 %v1210_v40, %v1685_v44 }
 0x2a3   : > { %v654_v45 = vpop.f32.mrf.mxu0 }
 0x2a4   : > { %v702_v56 = vmax.f32 %v638_v41, %v654_v45 }
 0x2a5   : > { %v1687_v46 = vpop.f32.mrf.mxu0 }
 0x2a6   : > { %v705_v53 = vmax.f32 %v1211_v42, %v1687_v46 }
 0x2a7   : > { %v657_v47 = vpop.f32.mrf.mxu0 }
 0x2a8   : > { %v703_v57 = vmax.f32 %v641_v43, %v657_v47 }
 0x2a9   : > { %v1689_v48 = vpop.f32.mrf.mxu0 }
 0x2aa   : > { %v708_v60 = vmax.f32 %v704_v55, %v1689_v48 }
 0x2ab   : > { %v1691_v49 = vpop.f32.mrf.mxu0 }
 0x2ac   : > { %v706_v61 = vmax.f32 %v702_v56, %v1691_v49 }
 0x2ad   : > { %v1693_v50 = vpop.f32.mrf.mxu0 }
 0x2ae   : > { %v709_v58 = vmax.f32 %v705_v53, %v1693_v50 }
 0x2af   : > { %v1695_v51 = vpop.f32.mrf.mxu0 }
 0x2b0   : > { %v707_v62 = vmax.f32 %v703_v57, %v1695_v51 }
 0x2b1   : > { %v1697_v52 = vpop.f32.mrf.mxu0 }
 0x2b2   : > { %v712_v1 = vmax.f32 %v708_v60, %v1697_v52 }
 0x2b3   : > { %v686_v54 = vpop.f32.mrf.mxu0 }
 0x2b4   : > { %v710_v2 = vmax.f32 %v706_v61, %v686_v54 }
 0x2b5   : > { %v1702_v59 = vpop.f32.mrf.mxu0 }
 0x2b6   : > { %v713_v63 = vmax.f32 %v709_v58, %v1702_v59 }
 0x2b7   : > { %v689_v0 = vpop.f32.mrf.mxu0 }
 0x2b8   : > { %v711_v3 = vmax.f32 %v707_v62, %v689_v0  ;;  %v715_v4 = vmax.f32 %v712_v1, %v713_v63 }
 0x2ba   : > { %v714_v5 = vmax.f32 %v710_v2, %v711_v3 }
 0x2bc   : > { %v716_v6 = vmax.f32 %v714_v5, %v715_v4 }
 0x2be   : > { %v717_v7 = vrot.slane %v716_v6, 4 }
 0x2c0   : > { %v718_v8 = vmax.f32 %v716_v6, %v717_v7 }
 0x2c2   : > { %v719_v10 = vrot.slane %v718_v8, 2 }
 0x2c4   : > { %v720_v11 = vmax.f32 %v718_v8, %v719_v10 }
 0x2c6   : > { %v721_v13 = vrot.slane %v720_v11, 1 }
 0x2c8   : > { %v722_v15 = vmax.f32 %v720_v11, %v721_v13 }
 0x2ca   : > { %v723_v17 = vmax.f32 %v701_v14, %v722_v15 }
 0x2cc   : > { %v724_v18 = vsub.f32 %v701_v14, %v723_v17  ;;  %v731_v19 = vrot.slane %v723_v17, %v1709_v16  ;;  %901 = vst [vmem:[#allocation3] sm:$0x1] %v723_v17 }
 0x2ce   : > { %v725_v20 = vmul.f32 1.442695, %v724_v18  ;;  %v733_v21 = vsub.f32 %v638_v41, %v731_v19  ;;  %v734_v22 = vsub.f32 %v641_v43, %v731_v19  ;;  %v735_v23 = vsub.f32 %v1210_v40, %v731_v19 }
 0x2cf   : > { %v736_v24 = vsub.f32 %v1211_v42, %v731_v19  ;;  %v737_v27 = vsub.f32 %v654_v45, %v731_v19  ;;  %v738_v29 = vsub.f32 %v657_v47, %v731_v19  ;;  %v739_v30 = vsub.f32 %v1685_v44, %v731_v19 }
 0x2d0   : > { %1345 = vpow2.f32 %v725_v20  ;;  %v749_v25 = vmul.f32 1.442695, %v733_v21  ;;  %v751_v26 = vmul.f32 1.442695, %v734_v22  ;;  %v753_v28 = vmul.f32 1.442695, %v735_v23 }
 0x2d1   : > { %v755_v31 = vmul.f32 1.442695, %v736_v24  ;;  %v740_v32 = vsub.f32 %v1687_v46, %v731_v19  ;;  %v741_v33 = vsub.f32 %v1691_v49, %v731_v19  ;;  %v757_v34 = vmul.f32 1.442695, %v737_v27 }
 0x2d2   : > { %1347 = vpow2.f32 %v749_v25  ;;  %v745_v35 = vsub.f32 %v686_v54, %v731_v19  ;;  %v759_v36 = vmul.f32 1.442695, %v738_v29  ;;  %v746_v37 = vsub.f32 %v689_v0, %v731_v19 }
 0x2d3   : > { %1349 = vpow2.f32 %v751_v26  ;;  %v761_v38 = vmul.f32 1.442695, %v739_v30  ;;  %v763_v39 = vmul.f32 1.442695, %v740_v32  ;;  %v747_v40 = vsub.f32 %v1697_v52, %v731_v19 }
 0x2d4   : > { %1351 = vpow2.f32 %v753_v28  ;;  %v765_v41 = vmul.f32 1.442695, %v741_v33  ;;  %v748_v42 = vsub.f32 %v1702_v59, %v731_v19  ;;  %v773_v43 = vmul.f32 1.442695, %v745_v35 }
 0x2d5   : > { %1353 = vpow2.f32 %v755_v31  ;;  %v742_v45 = vsub.f32 %v1695_v51, %v731_v19  ;;  %v775_v46 = vmul.f32 1.442695, %v746_v37  ;;  %v743_v47 = vsub.f32 %v1689_v48, %v731_v19 }
 0x2d6   : > { %1355 = vpow2.f32 %v757_v34  ;;  %v777_v49 = vmul.f32 1.442695, %v747_v40  ;;  %v744_v52 = vsub.f32 %v1693_v50, %v731_v19  ;;  %v779_v54 = vmul.f32 1.442695, %v748_v42  ;;  %v781_v34 = vld [vmem:[#allocation4] sm:$0x1] }
 0x2d7   : > { %1357 = vpow2.f32 %v759_v36  ;;  %v767_v56 = vmul.f32 1.442695, %v742_v45  ;;  %v769_v57 = vmul.f32 1.442695, %v743_v47  ;;  %v1344_v40 = vld [vmem:[%s408_s28 + $0x8] sm:$0xff]   ;;  %v806_v42 = vld [vmem:[#allocation5 + $0x10] sm:$0xff] }
 0x2d8   : > { %1359 = vpow2.f32 %v761_v38  ;;  %v771_v48 = vmul.f32 1.442695, %v744_v52  ;;  %v807_v52 = vld [vmem:[#allocation5] sm:$0xff] }
 0x2d9   : > { %1361 = vpow2.f32 %v763_v39 }
 0x2da   : > { %1363 = vpow2.f32 %v765_v41  ;;  %v808_v41 = vld [vmem:[#allocation5 + $0x18] sm:$0xff] }
 0x2db   : > { %1365 = vpow2.f32 %v773_v43 }
 0x2dc   : > { %1367 = vpow2.f32 %v775_v46  ;;  %v809_v46 = vld [vmem:[#allocation5 + $0x8] sm:$0xff] }
 0x2dd   : > { %v1717_v44 = vpop.eup %1345  ;;  %1369 = vpow2.f32 %v777_v49 }
 0x2de   : > { %v1723_v53 = vrot.slane %v1717_v44, %v1709_v16  ;;  %1371 = vpow2.f32 %v779_v54  ;;  %v782_v36 = vmul.f32 %v1717_v44, %v781_v34 }
 0x2df   : > { %v1726_v55 = vpop.eup %1347  ;;  %1373 = vpow2.f32 %v767_v56 }
 0x2e0   : > { %v1728_v51 = vpop.eup %1349  ;;  %1375 = vpow2.f32 %v769_v57  ;;  %v818_v43 = vmul.f32 %v1723_v53, %v808_v41  ;;  %v816_v44 = vmul.f32 %v1723_v53, %v806_v42  ;;  %v817_v57 = vmul.f32 %v1723_v53, %v807_v52 }
 0x2e1   : > { %v783_v58 = vadd.f32 %v1728_v51, %v1726_v55  ;;  %v1352_v59 = vpop.eup %1351  ;;  %1377 = vpow2.f32 %v771_v48  ;;  %v824_v38 = vpack.c.bf16 %v1728_v51, %v1726_v55  ;;  %v819_v55 = vmul.f32 %v1723_v53, %v809_v46 }
 0x2e2   : > { %v1354_v50 = vpop.eup %1353 }
 0x2e3   : > { %v784_v60 = vadd.f32 %v1352_v59, %v783_v58  ;;  %v1356_v62 = vpop.eup %1355  ;;  %v825_v33 = vpack.c.bf16 %v1354_v50, %v1352_v59 }
 0x2e4   : > { %v1358_v63 = vpop.eup %1357 }
 0x2e5   : > { %v785_v61 = vadd.f32 %v1354_v50, %v784_v60  ;;  %v1360_v1 = vpop.eup %1359  ;;  %v826_v30 = vpack.c.bf16 %v1358_v63, %v1356_v62 }
 0x2e6   : > { %v1362_v2 = vpop.eup %1361 }
 0x2e7   : > { %v786_v0 = vadd.f32 %v1356_v62, %v785_v61  ;;  %v1364_v4 = vpop.eup %1363  ;;  %v827_v27 = vpack.c.bf16 %v1362_v2, %v1360_v1 }
 0x2e8   : > { %v1366_v5 = vpop.eup %1365 }
 0x2e9   : > { %v787_v3 = vadd.f32 %v1358_v63, %v786_v0  ;;  %v1368_v7 = vpop.eup %1367 }
 0x2ea   : > { %v1370_v8 = vpop.eup %1369  ;;  %v830_v17 = vpack.c.bf16 %v1368_v7, %v1366_v5 }
 0x2eb   : > { %v788_v6 = vadd.f32 %v1360_v1, %v787_v3  ;;  %v1372_v10 = vpop.eup %1371 }
 0x2ec   : > { %v831_v12 = vpack.c.bf16 %v1372_v10, %v1370_v8  ;;  %v1374_v13 = vpop.eup %1373 }
 0x2ed   : > { %v789_v9 = vadd.f32 %v1362_v2, %v788_v6  ;;  %v1376_v14 = vpop.eup %1375  ;;  %v828_v24 = vpack.c.bf16 %v1374_v13, %v1364_v4 }
 0x2ee   : > { %1224 = vmatprep.subr.bf16.mxu1 %v831_v12  ;;  %v1378_v18 = vpop.eup %1377 }
 0x2ef   : > { %v790_v11 = vadd.f32 %v1364_v4, %v789_v9  ;;  %1225 = vmatpush3.bf16.msra.mxu1 %v831_v12  ;;  %v829_v21 = vpack.c.bf16 %v1378_v18, %v1376_v14 }
 0x2f0   : > { %1226 = vmatprep.subr.bf16.mxu1 %v830_v17 }
 0x2f1   : > { %v791_v15 = vadd.f32 %v1374_v13, %v790_v11 }
 0x2f3   : > { %v792_v19 = vadd.f32 %v1376_v14, %v791_v15  ;;  %1227 = vmatpush3.bf16.msra.mxu1 %v830_v17 }
 0x2f4   : > { %1228 = vmatprep.subr.bf16.mxu1 %v829_v21 }
 0x2f5   : > { %v793_v20 = vadd.f32 %v1378_v18, %v792_v19 }
 0x2f7   : > { %v794_v22 = vadd.f32 %v1366_v5, %v793_v20  ;;  %1229 = vmatpush3.bf16.msra.mxu1 %v829_v21 }
 0x2f8   : > { %1230 = vmatprep.subr.bf16.mxu1 %v828_v24 }
 0x2f9   : > { %v795_v23 = vadd.f32 %v1368_v7, %v794_v22 }
 0x2fb   : > { %v796_v25 = vadd.f32 %v1370_v8, %v795_v23  ;;  %1231 = vmatpush3.bf16.msra.mxu1 %v828_v24 }
 0x2fc   : > { %1232 = vmatprep.subr.bf16.mxu1 %v827_v27 }
 0x2fd   : > { %v797_v26 = vadd.f32 %v1372_v10, %v796_v25 }
 0x2ff   : > { %v798_v28 = vrot.slane %v797_v26, 4  ;;  %1233 = vmatpush3.bf16.msra.mxu1 %v827_v27 }
 0x300   : > { %1234 = vmatprep.subr.bf16.mxu1 %v826_v30 }
 0x301   : > { %v799_v29 = vadd.f32 %v798_v28, %v797_v26 }
 0x303   : > { %v800_v31 = vrot.slane %v799_v29, 2  ;;  %1235 = vmatpush3.bf16.msra.mxu1 %v826_v30 }
 0x304   : > { %1236 = vmatprep.subr.bf16.mxu1 %v825_v33 }
 0x305   : > { %v801_v32 = vadd.f32 %v800_v31, %v799_v29 }
 0x307   : > { %v802_v35 = vrot.slane %v801_v32, 1  ;;  %1237 = vmatpush3.bf16.msra.mxu1 %v825_v33 }
 0x308   : > { %1238 = vmatprep.subr.bf16.mxu1 %v824_v38 }
 0x309   : > { %v803_v37 = vadd.f32 %v802_v35, %v801_v32 }
 0x30b   : > { %v804_v39 = vadd.f32 %v803_v37, %v782_v36  ;;  %1239 = vmatpush3.bf16.msra.mxu1 %v824_v38 }
 0x30d   : > { %805 = vst [vmem:[#allocation4] sm:$0x1] %v804_v39 }
 0x30e   : > { %1241 = vmatmul.mubr.bf16.vlgmr.msra.gmra.mxu1 %v1344_v40 }
 0x3ce   : > { %v1242_v45 = vpop.f32.mrf.mxu1 }
 0x3cf   : > { %v895_v47 = vadd.f32 %v1242_v45, %v818_v43 }
 0x3d0   : > { %v878_v49 = vpop.f32.mrf.mxu1 }
 0x3d1   : > { %899 = vst [vmem:[#allocation5 + $0x18] sm:$0xff] %v895_v47  ;;  %v893_v54 = vadd.f32 %v878_v49, %v816_v44 }
 0x3d2   : > { %v1243_v56 = vpop.f32.mrf.mxu1 }
 0x3d3   : > { %897 = vst [vmem:[#allocation5 + $0x10] sm:$0xff] %v893_v54  ;;  %v896_v51 = vadd.f32 %v1243_v56, %v819_v55  ;;  %905 = sbr.rel (%p1170_p5) target bundleno = 1121 (0x461), region = 135 }
 0x3d4   : > { %v881_v48 = vpop.f32.mrf.mxu1 }
 0x3d5   : > { %900 = vst [vmem:[#allocation5 + $0x8] sm:$0xff] %v896_v51  ;;  %v894_v58 = vadd.f32 %v881_v48, %v817_v57 }
 0x3d7   : > { %898 = vst [vmem:[#allocation5] sm:$0xff] %v894_v58 }
 0x3d8   : > { %v925_v59 = vld [vmem:[%s1812_s5 + $0x10] sm:$0xff]  ;;  %v923_v60 = vld [vmem:[%s1812_s5] sm:$0xff]  ;;  %v1475_v50 = vmov 0   ;;  %v926_v53 = vld [vmem:[%s1812_s5 + $0x18] sm:$0xff]  ;;  %v951_v8 = vstv %s908_s20 }
 0x3d9   : > { %1380 = vset.pattern.permute.xlu1 %v1475_v50  ;;  %1379 = vset.pattern.permute.xlu0 %v1475_v50  ;;  %v924_v61 = vld [vmem:[%s1812_s5 + $0x8] sm:$0xff]  ;;  %v906_v62 = vld [vmem:[#allocation4] sm:$0x1]  ;;  %v958_v14 = vld [vmem:[%s1655_s0 + $0x10] sm:$0xff] }
 0x3da   : > { %939 = vperm.xlu1 %1380, %v925_v59   ;;  %929 = vperm.xlu0 %1379, %v923_v60   ;;  %1381 = vrcp.f32 %v906_v62  ;;  %v911_v1 = vld [vmem:[#allocation5 + $0x18] sm:$0xff]  ;;  %v909_v2 = vld [vmem:[#allocation5 + $0x10] sm:$0xff]  ;;  %v956_v15 = vld [vmem:[%s1655_s0] sm:$0xff] }
 0x3db   : > { %v959_v24 = vld [vmem:[%s1655_s0 + $0x18] sm:$0xff]  ;;  %v957_v25 = vld [vmem:[%s1655_s0 + $0x8] sm:$0xff] }
 0x3dc   : > { %v912_v5 = vld [vmem:[#allocation5 + $0x8] sm:$0xff] }
 0x3de   : > { %944 = vperm.xlu1 %1380, %v926_v53   ;;  %934 = vperm.xlu0 %1379, %v924_v61   ;;  %v910_v6 = vld [vmem:[#allocation5] sm:$0xff] }
 0x3e7   : > { %v1382_v63 = vpop.eup %1381 }
 0x3e8   : > { %v917_v0 = vrot.slane %v1382_v63, %v1709_v16 }
 0x3ea   : > { %v921_v3 = vmul.f32 %v917_v0, %v911_v1  ;;  %v919_v4 = vmul.f32 %v917_v0, %v909_v2  ;;  %v922_v12 = vmul.f32 %v917_v0, %v912_v5  ;;  %v920_v13 = vmul.f32 %v917_v0, %v910_v6 }
 0x455   : > { %v940_v7 = vpop.permute.xlu1 %939  ;;  %v930_v9 = vpop.permute.xlu0 %929 }
 0x456   : > { %v949_v10 = vadd.f32 %v940_v7, %v921_v3  ;;  %v947_v11 = vadd.f32 %v930_v9, %v919_v4 }
 0x458   : > { %v954_v16 = vmul.f32 %v951_v8, %v949_v10  ;;  %v952_v17 = vmul.f32 %v951_v8, %v947_v11 }
 0x459   : > { %v945_v18 = vpop.permute.xlu1 %944  ;;  %v935_v19 = vpop.permute.xlu0 %934 }
 0x45a   : > { %v962_v20 = vadd.f32 %v958_v14, %v954_v16  ;;  %v960_v21 = vadd.f32 %v956_v15, %v952_v17  ;;  %v950_v22 = vadd.f32 %v945_v18, %v922_v12  ;;  %v948_v23 = vadd.f32 %v935_v19, %v920_v13 }
 0x45c   : > { %966 = vst [vmem:[%s1658_s26 + $0x10] sm:$0xff] %v962_v20  ;;  %964 = vst [vmem:[%s1658_s26] sm:$0xff] %v960_v21  ;;  %v955_v26 = vmul.f32 %v951_v8, %v950_v22  ;;  %v953_v27 = vmul.f32 %v951_v8, %v948_v23 }
 0x45e   : > { %v963_v28 = vadd.f32 %v959_v24, %v955_v26  ;;  %v961_v29 = vadd.f32 %v957_v25, %v953_v27 }
 0x460   : > { %967 = vst [vmem:[%s1658_s26 + $0x18] sm:$0xff] %v963_v28  ;;  %965 = vst [vmem:[%s1658_s26 + $0x8] sm:$0xff] %v961_v29 }
 0x461 PF: > { %974 = sbr.rel (!%p1610_p9) target bundleno = 1132 (0x46c), region = 139  ;;  %s1828_s21 = sld [smem:[#allocation10_spill]] (%p1610_p9) }
 0x462   : > { %s1172_s15 = sshll.u32 (%p1610_p9), %s1453_s9, 3  ;;  %s1829_s7 = sld [smem:[#allocation15_spill]] (%p1610_p9) }
 0x463   : > { %v1013_v30 = vld [vmem:[%s1658_s26] sm:$0xff] (%p1610_p9)  ;;  %v1017_v32 = vld [vmem:[%s1658_s26 + $0x10] sm:$0xff] (%p1610_p9) }
 0x467   : > { %s976_s0 = sadd.s32 %s1828_s21, %s1172_s15  ;;  %v1015_v31 = vld [vmem:[%s1658_s26 + $0x8] sm:$0xff]  ;;  %v1019_v33 = vld [vmem:[%s1658_s26 + $0x18] sm:$0xff] }
 0x468   : > { %s1173_s17 = sshll.u32 %s976_s0, 3 }
 0x469   : > { %s978_s19 = scalar_lea.vmem %s1829_s7, %s1173_s17 }
 0x46a   : > { %1014 = vst [vmem:[%s978_s19] sm:$0xff] %v1013_v30  ;;  %1016 = vst [vmem:[%s978_s19 + $0x10] sm:$0xff] %v1015_v31 }
 0x46b   : > { %1018 = vst [vmem:[%s978_s19 + $0x20] sm:$0xff] %v1017_v32  ;;  %1020 = vst [vmem:[%s978_s19 + $0x30] sm:$0xff] %v1019_v33 }
 0x46c PF: > { %s18_s6 = sadd.s32 1, %s1469_s6   ;;  %s1830_s22 = sld [smem:[#allocation11_spill]] }
 0x46d   : > { %p15_p6 = scmp.ge.s32.totalorder %s18_s6, 10   ;;  %s1831_s18 = sld [smem:[#allocation12_spill]] }
 0x46e   : > { %s1832_s23 = sld [smem:[#allocation13_spill]]  ;;  %s1833_s26 = smov %s1433_s27 }
 0x46f   : > { %s1834_s27 = smov %s1621_s14  ;;  %s1835_s28 = smov %s1441_s29 }
 0x470   : > { %s1836_s29 = smov %s1618_s16  ;;  %s1837_s30 = smov %s1457_s10 }
 0x471   : > { %s1838_s8 = smov %s1461_s11  ;;  %s1839_s9 = smov %s1465_s12 }
 0x472   : > { %s1840_s10 = smov %s1830_s22  ;;  %17 = sbr.rel (!%p15_p6) target bundleno = 10 (0xa), region = 219 }
 0x473   : > { %s1841_s11 = smov %s1831_s18 }
 0x474   : > { %s1842_s12 = smov %s1832_s23 }

</bundles_post_ra>
